<compile_context>
chip_gen: v7x
topology: tpu7x:2x2x1
jax: 0.10.0
libtpu: 0.0.40
codegen_flags: <defaults>
</compile_context>

<pallas_src>
import functools

import jax
import jax.numpy as jnp
from jax.experimental import pallas as pl
from jax.experimental.pallas import tpu as pltpu


def _cope_kernel(q_ref, logits_ref, emb_ref, out_ref,
                 li_ref, carry_ref, tri_ref, *, npos_max, matmul_dtype):
    # q_ref:      (tr, D)    query rows for this row tile
    # logits_ref: (tr, tk)   attention logits tile (K walked in reverse)
    # emb_ref:    (D, P)     positional embedding table (shared)
    # out_ref:    (tr, tk)
    # li_ref:     (tr, P)    scratch: hoisted logits_int = q @ emb
    # carry_ref:  (tr, 1)    scratch: suffix-sum of gates over K tiles to the right
    # tri_ref:    (tk, tk)   scratch: T[j, k] = 1.0 if j >= k (in-tile rev-cumsum)
    kk = pl.program_id(1)
    tk = tri_ref.shape[0]

    @pl.when(kk == 0)
    def _init():
        # reset suffix-sum carry for this row tile
        carry_ref[...] = jnp.zeros_like(carry_ref)
        # hoisted: interpolated position logits, computed once per row tile.
        # bf16 inputs feed the MXU at full rate on v6e/v7x; accumulate in f32.
        li_ref[...] = jnp.dot(q_ref[...].astype(matmul_dtype),
                              emb_ref[...].astype(matmul_dtype),
                              preferred_element_type=jnp.float32)
        # triangular matrix built in-kernel (no HBM operand / DMA / extra VMEM copy)
        row = jax.lax.broadcasted_iota(jnp.int32, (tk, tk), 0)
        col = jax.lax.broadcasted_iota(jnp.int32, (tk, tk), 1)
        tri_ref[...] = (row >= col).astype(jnp.float32)

    gates = jax.nn.sigmoid(logits_ref[...].astype(jnp.float32))        # (tr, tk)

    # reverse cumsum: pos[r, k] = sum_{j >= k, this tile} gates[r, j] + carry.
    # Kept in f32: bf16 gates would add ~K * 2^-9 drift to pos.
    pos = jnp.dot(gates, tri_ref[...], preferred_element_type=jnp.float32)
    pos = pos + carry_ref[...]
    pos = jnp.minimum(pos, jnp.float32(npos_max - 1))                  # clamp(max=P-1)

    # carry for the next (leftward) K tile
    carry_ref[...] = carry_ref[...] + jnp.sum(gates, axis=-1, keepdims=True)

    # gather + linear interpolation == tent-weighted sum over the small P axis.
    li = li_ref[...]                                                    # (tr, P) f32
    acc = jnp.zeros_like(pos)                                           # (tr, tk)
    d = pos                                                             # d = pos - p
    for p in range(npos_max):                                           # P small & static
        w = jnp.maximum(1.0 - jnp.abs(d), 0.0)
        acc = acc + w * li[:, p:p + 1]                                  # (tr,1)->(tr,tk)
        d = d - 1.0
    out_ref[...] = acc.astype(out_ref.dtype)


def _pick_tile(n, candidates):
    for c in candidates:
        if n % c == 0:
            return c
    return n  # full extent (always legal for a BlockSpec dim)


def cope_unit_pallas(query, attn_logits, pos_emb, *, npos_max,
                     matmul_dtype=jnp.float32, out_dtype=jnp.float32,
                     row_tile=None, k_tile=None):
    """query (B,Q,D), attn_logits (B,Q,K), pos_emb (D,P) -> (B,Q,K).

    matmul_dtype=jnp.bfloat16 feeds the q@pos_emb matmul to the MXU in bf16
    (recommended on v6e/v7x); all other math stays f32.
    """
    B, Q, D = query.shape
    _, _, K = attn_logits.shape
    P = pos_emb.shape[-1]
    assert P == npos_max

    # Fold batch (and heads, if pre-merged) into the row axis: every row is
    # independent, blocks become 2-D and lane-dense, per-step overhead amortized.
    R = B * Q
    q2 = query.reshape(R, D)
    l2 = attn_logits.reshape(R, K)

    tr = row_tile if row_tile is not None else _pick_tile(R, (512, 256, 128, 64, 32, 16, 8))
    tk = k_tile if k_tile is not None else _pick_tile(K, (512, 256, 128))
    assert R % tr == 0 and K % tk == 0
    nr, nk = R // tr, K // tk

    kernel = functools.partial(_cope_kernel, npos_max=npos_max,
                               matmul_dtype=matmul_dtype)

    out_itemsize = jnp.dtype(out_dtype).itemsize
    cost = pl.CostEstimate(
        flops=2 * R * K * tk + 2 * R * D * P + 4 * R * K * P,
        transcendentals=R * K,                                   # sigmoid
        bytes_accessed=4 * (R * D + R * K + D * P) + R * K * out_itemsize)

    out2 = pl.pallas_call(
        kernel,
        out_shape=jax.ShapeDtypeStruct((R, K), out_dtype),
        grid_spec=pltpu.PrefetchScalarGridSpec(
            num_scalar_prefetch=0,
            grid=(nr, nk),                                        # K last, reversed
            in_specs=[
                pl.BlockSpec((tr, D), lambda r, k: (r, 0)),                  # query rows
                pl.BlockSpec((tr, tk), lambda r, k, nk=nk: (r, nk - 1 - k)), # logits
                pl.BlockSpec((D, P), lambda r, k: (0, 0)),                   # pos_emb
            ],
            out_specs=pl.BlockSpec((tr, tk), lambda r, k, nk=nk: (r, nk - 1 - k)),
            scratch_shapes=[
                pltpu.VMEM((tr, P), jnp.float32),   # hoisted logits_int
                pltpu.VMEM((tr, 1), jnp.float32),   # suffix-sum carry
                pltpu.VMEM((tk, tk), jnp.float32),  # in-tile triangular matrix
            ],
        ),
        compiler_params=pltpu.CompilerParams(
            dimension_semantics=("parallel", "arbitrary"),   # rows shard across TCs (v7x)
            vmem_limit_bytes=32 * 1024 * 1024),
        cost_estimate=cost,
    )(q2, l2, pos_emb)
    return out2.reshape(B, Q, K)


def cope_unit_ref(query, attn_logits, pos_emb, *, npos_max):
    """Pure-JAX reference mirroring the PyTorch forward exactly."""
    gates = jax.nn.sigmoid(attn_logits)
    pos = jnp.flip(jnp.cumsum(jnp.flip(gates, axis=-1), axis=-1), axis=-1)
    pos = jnp.minimum(pos, npos_max - 1)
    pos_ceil = jnp.ceil(pos).astype(jnp.int32)
    pos_floor = jnp.floor(pos).astype(jnp.int32)
    logits_int = jnp.einsum("bqd,dp->bqp", query, pos_emb)
    logits_ceil = jnp.take_along_axis(logits_int, pos_ceil, axis=-1)
    logits_floor = jnp.take_along_axis(logits_int, pos_floor, axis=-1)
    w = pos - pos_floor
    return logits_ceil * w + logits_floor * (1.0 - w)


if __name__ == "__main__":
    # --- small shapes consistent with the module -----------------------------
    B, Q, K, D, NPOS_MAX = 2, 16, 16, 32, 8
    kq, kl, kp = jax.random.split(jax.random.PRNGKey(0), 3)
    query = jax.random.normal(kq, (B, Q, D), dtype=jnp.float32)
    attn_logits = jax.random.normal(kl, (B, Q, K), dtype=jnp.float32)
    # Parameter pos_emb: torch init is zeros(1, D, P); use a deterministic
    # non-trivial init here so the kernel output is meaningful.
    pos_emb = 0.02 * jax.random.normal(kp, (D, NPOS_MAX), dtype=jnp.float32)

    out = jax.block_until_ready(
        cope_unit_pallas(query, attn_logits, pos_emb, npos_max=NPOS_MAX))
    ref = cope_unit_ref(query, attn_logits, pos_emb, npos_max=NPOS_MAX)
    assert out.shape == (B, Q, K)
    assert jnp.allclose(out, ref, atol=1e-4, rtol=1e-4), (
        f"max abs err = {jnp.max(jnp.abs(out - ref))}")

    # --- larger shapes exercising row tiling + K tiling with suffix-sum carry ---
    B2, Q2, K2, D2, P2 = 2, 64, 384, 64, 16        # R=128 (tr=64 -> 2 row tiles), nk=3
    kq2, kl2, kp2 = jax.random.split(jax.random.PRNGKey(1), 3)
    query2 = jax.random.normal(kq2, (B2, Q2, D2), dtype=jnp.float32)
    attn_logits2 = jax.random.normal(kl2, (B2, Q2, K2), dtype=jnp.float32)
    pos_emb2 = 0.02 * jax.random.normal(kp2, (D2, P2), dtype=jnp.float32)

    out2 = jax.block_until_ready(
        cope_unit_pallas(query2, attn_logits2, pos_emb2, npos_max=P2, row_tile=64))
    ref2 = cope_unit_ref(query2, attn_logits2, pos_emb2, npos_max=P2)
    assert jnp.allclose(out2, ref2, atol=1e-3, rtol=1e-3), (
        f"max abs err = {jnp.max(jnp.abs(out2 - ref2))}")

    # --- bf16 MXU-input fast path (v6e/v7x), looser tolerance ---------------
    out3 = jax.block_until_ready(
        cope_unit_pallas(query2, attn_logits2, pos_emb2, npos_max=P2,
                         matmul_dtype=jnp.bfloat16, row_tile=64))
    assert jnp.allclose(out3, ref2, atol=5e-2, rtol=5e-2), (
        f"max abs err (bf16 matmul) = {jnp.max(jnp.abs(out3 - ref2))}")

    print("KERNEL_OK")
</pallas_src>

<mosaic_0001>
module attributes {stable_mosaic.version = 11 : i64} {
  func.func @_cope_kernel(%arg0: i32, %arg1: i32, %arg2: memref<32x32xf32, #tpu.memory_space<vmem>>, %arg3: memref<32x16xf32, #tpu.memory_space<vmem>>, %arg4: memref<32x8xf32, #tpu.memory_space<vmem>>, %arg5: memref<32x16xf32, #tpu.memory_space<vmem>>, %arg6: memref<32x8xf32, #tpu.memory_space<vmem>>, %arg7: memref<32x1xf32, #tpu.memory_space<vmem>>, %arg8: memref<16x16xf32, #tpu.memory_space<vmem>>) attributes {dimension_semantics = [#tpu.dimension_semantics<parallel>, #tpu.dimension_semantics<arbitrary>], iteration_bounds = array<i64: 1, 1>, scalar_prefetch = 0 : i64, scratch_operands = 3 : i64, tpu.core_type = #tpu.core_type<tc>, window_params = [{transform_indices = @transform_0, window_bounds = array<i64: 32, 32>}, {transform_indices = @transform_1, window_bounds = array<i64: 32, 16>}, {pipeline_mode = #tpu.pipeline_mode<synchronous>, transform_indices = @transform_2, window_bounds = array<i64: 32, 8>}, {transform_indices = @transform_3, window_bounds = array<i64: 32, 16>}]} {
    %c0_i32 = arith.constant 0 : i32
    %0 = arith.cmpi eq, %arg1, %c0_i32 : i32
    %1 = arith.extui %0 : i1 to i32
    %c0_i32_0 = arith.constant 0 : i32
    %2 = arith.cmpi ne, %1, %c0_i32_0 : i32
    scf.if %2 {
      %cst_41 = arith.constant 0.000000e+00 : f32
      %110 = vector.broadcast %cst_41 : f32 to vector<32x1xf32>
      %c0_42 = arith.constant 0 : index
      %c0_43 = arith.constant 0 : index
      %111 = vector.load %arg7[%c0_42, %c0_43] : memref<32x1xf32, #tpu.memory_space<vmem>>, vector<32x1xf32>
      tpu.vector_store %arg7[%c0_42, %c0_43], %110 {strides = array<i32>} : memref<32x1xf32, #tpu.memory_space<vmem>>, vector<32x1xf32>,
      %c0_44 = arith.constant 0 : index
      %c0_45 = arith.constant 0 : index
      %112 = vector.load %arg2[%c0_44, %c0_45] : memref<32x32xf32, #tpu.memory_space<vmem>>, vector<32x32xf32>
      %c0_46 = arith.constant 0 : index
      %c0_47 = arith.constant 0 : index
      %113 = vector.load %arg4[%c0_46, %c0_47] : memref<32x8xf32, #tpu.memory_space<vmem>>, vector<32x8xf32>
      %cst_48 = arith.constant dense<0.000000e+00> : vector<32x8xf32>
      %114 = tpu.matmul %112, %113, %cst_48 {dimension_numbers = #tpu.dot_dimension_numbers<[1], [0], [0], [1], [0, 0, 1, 1], [], []>} : vector<32x32xf32>, vector<32x8xf32>, vector<32x8xf32> -> vector<32x8xf32>
      %c0_49 = arith.constant 0 : index
      %c0_50 = arith.constant 0 : index
      %115 = vector.load %arg6[%c0_49, %c0_50] : memref<32x8xf32, #tpu.memory_space<vmem>>, vector<32x8xf32>
      tpu.vector_store %arg6[%c0_49, %c0_50], %114 {strides = array<i32>} : memref<32x8xf32, #tpu.memory_space<vmem>>, vector<32x8xf32>,
      %116 = tpu.iota {dimensions = array<i32: 0>} : vector<16x16xi32>
      %117 = tpu.iota {dimensions = array<i32: 1>} : vector<16x16xi32>
      %118 = arith.cmpi sge, %116, %117 : vector<16x16xi32>
      %119 = arith.extui %118 : vector<16x16xi1> to vector<16x16xi32>
      %120 = arith.sitofp %119 : vector<16x16xi32> to vector<16x16xf32>
      %c0_51 = arith.constant 0 : index
      %c0_52 = arith.constant 0 : index
      %121 = vector.load %arg8[%c0_51, %c0_52] : memref<16x16xf32, #tpu.memory_space<vmem>>, vector<16x16xf32>
      tpu.vector_store %arg8[%c0_51, %c0_52], %120 {strides = array<i32>} : memref<16x16xf32, #tpu.memory_space<vmem>>, vector<16x16xf32>,
    } else {
    }
    %c0 = arith.constant 0 : index
    %c0_1 = arith.constant 0 : index
    %3 = vector.load %arg3[%c0, %c0_1] : memref<32x16xf32, #tpu.memory_space<vmem>>, vector<32x16xf32>
    %4 = arith.negf %3 : vector<32x16xf32>
    %5 = math.exp %4 : vector<32x16xf32>
    %cst = arith.constant 1.000000e+00 : f32
    %6 = vector.broadcast %cst : f32 to vector<32x16xf32>
    %7 = arith.addf %6, %5 : vector<32x16xf32>
    %8 = arith.divf %6, %7 : vector<32x16xf32>
    %c0_2 = arith.constant 0 : index
    %c0_3 = arith.constant 0 : index
    %9 = vector.load %arg8[%c0_2, %c0_3] : memref<16x16xf32, #tpu.memory_space<vmem>>, vector<16x16xf32>
    %cst_4 = arith.constant dense<0.000000e+00> : vector<32x16xf32>
    %10 = tpu.matmul %8, %9, %cst_4 {dimension_numbers = #tpu.dot_dimension_numbers<[1], [0], [0], [1], [0, 0, 1, 1], [], []>} : vector<32x16xf32>, vector<16x16xf32>, vector<32x16xf32> -> vector<32x16xf32>
    %c0_5 = arith.constant 0 : index
    %c0_6 = arith.constant 0 : index
    %11 = vector.load %arg7[%c0_5, %c0_6] : memref<32x1xf32, #tpu.memory_space<vmem>>, vector<32x1xf32>
    %12 = vector.broadcast %11 : vector<32x1xf32> to vector<32x16xf32>
    %13 = arith.addf %10, %12 : vector<32x16xf32>
    %cst_7 = arith.constant 7.000000e+00 : f32
    %14 = vector.broadcast %cst_7 : f32 to vector<32x16xf32>
    %15 = arith.minimumf %13, %14 : vector<32x16xf32>
    %c0_8 = arith.constant 0 : index
    %c0_9 = arith.constant 0 : index
    %16 = vector.load %arg7[%c0_8, %c0_9] : memref<32x1xf32, #tpu.memory_space<vmem>>, vector<32x1xf32>
    %cst_10 = arith.constant dense<0.000000e+00> : vector<32xf32>
    %17 = vector.multi_reduction <add>, %8, %cst_10 [1] : vector<32x16xf32> to vector<32xf32>
    %18 = vector.shape_cast %17 : vector<32xf32> to vector<32x1xf32>
    %19 = arith.addf %16, %18 : vector<32x1xf32>
    %c0_11 = arith.constant 0 : index
    %c0_12 = arith.constant 0 : index
    %20 = vector.load %arg7[%c0_11, %c0_12] : memref<32x1xf32, #tpu.memory_space<vmem>>, vector<32x1xf32>
    tpu.vector_store %arg7[%c0_11, %c0_12], %19 {strides = array<i32>} : memref<32x1xf32, #tpu.memory_space<vmem>>, vector<32x1xf32>,
    %c0_13 = arith.constant 0 : index
    %c0_14 = arith.constant 0 : index
    %21 = vector.load %arg6[%c0_13, %c0_14] : memref<32x8xf32, #tpu.memory_space<vmem>>, vector<32x8xf32>
    %cst_15 = arith.constant 0.000000e+00 : f32
    %22 = vector.broadcast %cst_15 : f32 to vector<32x16xf32>
    %23 = math.absf %15 : vector<32x16xf32>
    %cst_16 = arith.constant 1.000000e+00 : f32
    %24 = vector.broadcast %cst_16 : f32 to vector<32x16xf32>
    %25 = arith.subf %24, %23 : vector<32x16xf32>
    %cst_17 = arith.constant 0.000000e+00 : f32
    %26 = vector.broadcast %cst_17 : f32 to vector<32x16xf32>
    %27 = arith.maximumf %25, %26 : vector<32x16xf32>
    %28 = vector.extract_strided_slice %21 {offsets = [0, 0], sizes = [32, 1], strides = [1, 1]} : vector<32x8xf32> to vector<32x1xf32>
    %29 = vector.broadcast %28 : vector<32x1xf32> to vector<32x16xf32>
    %30 = arith.mulf %27, %29 : vector<32x16xf32>
    %31 = arith.addf %22, %30 : vector<32x16xf32>
    %cst_18 = arith.constant 1.000000e+00 : f32
    %32 = vector.broadcast %cst_18 : f32 to vector<32x16xf32>
    %33 = arith.subf %15, %32 : vector<32x16xf32>
    %34 = math.absf %33 : vector<32x16xf32>
    %cst_19 = arith.constant 1.000000e+00 : f32
    %35 = vector.broadcast %cst_19 : f32 to vector<32x16xf32>
    %36 = arith.subf %35, %34 : vector<32x16xf32>
    %cst_20 = arith.constant 0.000000e+00 : f32
    %37 = vector.broadcast %cst_20 : f32 to vector<32x16xf32>
    %38 = arith.maximumf %36, %37 : vector<32x16xf32>
    %39 = vector.extract_strided_slice %21 {offsets = [0, 1], sizes = [32, 1], strides = [1, 1]} : vector<32x8xf32> to vector<32x1xf32>
    %40 = vector.broadcast %39 : vector<32x1xf32> to vector<32x16xf32>
    %41 = arith.mulf %38, %40 : vector<32x16xf32>
    %42 = arith.addf %31, %41 : vector<32x16xf32>
    %cst_21 = arith.constant 1.000000e+00 : f32
    %43 = vector.broadcast %cst_21 : f32 to vector<32x16xf32>
    %44 = arith.subf %33, %43 : vector<32x16xf32>
    %45 = math.absf %44 : vector<32x16xf32>
    %cst_22 = arith.constant 1.000000e+00 : f32
    %46 = vector.broadcast %cst_22 : f32 to vector<32x16xf32>
    %47 = arith.subf %46, %45 : vector<32x16xf32>
    %cst_23 = arith.constant 0.000000e+00 : f32
    %48 = vector.broadcast %cst_23 : f32 to vector<32x16xf32>
    %49 = arith.maximumf %47, %48 : vector<32x16xf32>
    %50 = vector.extract_strided_slice %21 {offsets = [0, 2], sizes = [32, 1], strides = [1, 1]} : vector<32x8xf32> to vector<32x1xf32>
    %51 = vector.broadcast %50 : vector<32x1xf32> to vector<32x16xf32>
    %52 = arith.mulf %49, %51 : vector<32x16xf32>
    %53 = arith.addf %42, %52 : vector<32x16xf32>
    %cst_24 = arith.constant 1.000000e+00 : f32
    %54 = vector.broadcast %cst_24 : f32 to vector<32x16xf32>
    %55 = arith.subf %44, %54 : vector<32x16xf32>
    %56 = math.absf %55 : vector<32x16xf32>
    %cst_25 = arith.constant 1.000000e+00 : f32
    %57 = vector.broadcast %cst_25 : f32 to vector<32x16xf32>
    %58 = arith.subf %57, %56 : vector<32x16xf32>
    %cst_26 = arith.constant 0.000000e+00 : f32
    %59 = vector.broadcast %cst_26 : f32 to vector<32x16xf32>
    %60 = arith.maximumf %58, %59 : vector<32x16xf32>
    %61 = vector.extract_strided_slice %21 {offsets = [0, 3], sizes = [32, 1], strides = [1, 1]} : vector<32x8xf32> to vector<32x1xf32>
    %62 = vector.broadcast %61 : vector<32x1xf32> to vector<32x16xf32>
    %63 = arith.mulf %60, %62 : vector<32x16xf32>
    %64 = arith.addf %53, %63 : vector<32x16xf32>
    %cst_27 = arith.constant 1.000000e+00 : f32
    %65 = vector.broadcast %cst_27 : f32 to vector<32x16xf32>
    %66 = arith.subf %55, %65 : vector<32x16xf32>
    %67 = math.absf %66 : vector<32x16xf32>
    %cst_28 = arith.constant 1.000000e+00 : f32
    %68 = vector.broadcast %cst_28 : f32 to vector<32x16xf32>
    %69 = arith.subf %68, %67 : vector<32x16xf32>
    %cst_29 = arith.constant 0.000000e+00 : f32
    %70 = vector.broadcast %cst_29 : f32 to vector<32x16xf32>
    %71 = arith.maximumf %69, %70 : vector<32x16xf32>
    %72 = vector.extract_strided_slice %21 {offsets = [0, 4], sizes = [32, 1], strides = [1, 1]} : vector<32x8xf32> to vector<32x1xf32>
    %73 = vector.broadcast %72 : vector<32x1xf32> to vector<32x16xf32>
    %74 = arith.mulf %71, %73 : vector<32x16xf32>
    %75 = arith.addf %64, %74 : vector<32x16xf32>
    %cst_30 = arith.constant 1.000000e+00 : f32
    %76 = vector.broadcast %cst_30 : f32 to vector<32x16xf32>
    %77 = arith.subf %66, %76 : vector<32x16xf32>
    %78 = math.absf %77 : vector<32x16xf32>
    %cst_31 = arith.constant 1.000000e+00 : f32
    %79 = vector.broadcast %cst_31 : f32 to vector<32x16xf32>
    %80 = arith.subf %79, %78 : vector<32x16xf32>
    %cst_32 = arith.constant 0.000000e+00 : f32
    %81 = vector.broadcast %cst_32 : f32 to vector<32x16xf32>
    %82 = arith.maximumf %80, %81 : vector<32x16xf32>
    %83 = vector.extract_strided_slice %21 {offsets = [0, 5], sizes = [32, 1], strides = [1, 1]} : vector<32x8xf32> to vector<32x1xf32>
    %84 = vector.broadcast %83 : vector<32x1xf32> to vector<32x16xf32>
    %85 = arith.mulf %82, %84 : vector<32x16xf32>
    %86 = arith.addf %75, %85 : vector<32x16xf32>
    %cst_33 = arith.constant 1.000000e+00 : f32
    %87 = vector.broadcast %cst_33 : f32 to vector<32x16xf32>
    %88 = arith.subf %77, %87 : vector<32x16xf32>
    %89 = math.absf %88 : vector<32x16xf32>
    %cst_34 = arith.constant 1.000000e+00 : f32
    %90 = vector.broadcast %cst_34 : f32 to vector<32x16xf32>
    %91 = arith.subf %90, %89 : vector<32x16xf32>
    %cst_35 = arith.constant 0.000000e+00 : f32
    %92 = vector.broadcast %cst_35 : f32 to vector<32x16xf32>
    %93 = arith.maximumf %91, %92 : vector<32x16xf32>
    %94 = vector.extract_strided_slice %21 {offsets = [0, 6], sizes = [32, 1], strides = [1, 1]} : vector<32x8xf32> to vector<32x1xf32>
    %95 = vector.broadcast %94 : vector<32x1xf32> to vector<32x16xf32>
    %96 = arith.mulf %93, %95 : vector<32x16xf32>
    %97 = arith.addf %86, %96 : vector<32x16xf32>
    %cst_36 = arith.constant 1.000000e+00 : f32
    %98 = vector.broadcast %cst_36 : f32 to vector<32x16xf32>
    %99 = arith.subf %88, %98 : vector<32x16xf32>
    %100 = math.absf %99 : vector<32x16xf32>
    %cst_37 = arith.constant 1.000000e+00 : f32
    %101 = vector.broadcast %cst_37 : f32 to vector<32x16xf32>
    %102 = arith.subf %101, %100 : vector<32x16xf32>
    %cst_38 = arith.constant 0.000000e+00 : f32
    %103 = vector.broadcast %cst_38 : f32 to vector<32x16xf32>
    %104 = arith.maximumf %102, %103 : vector<32x16xf32>
    %105 = vector.extract_strided_slice %21 {offsets = [0, 7], sizes = [32, 1], strides = [1, 1]} : vector<32x8xf32> to vector<32x1xf32>
    %106 = vector.broadcast %105 : vector<32x1xf32> to vector<32x16xf32>
    %107 = arith.mulf %104, %106 : vector<32x16xf32>
    %108 = arith.addf %97, %107 : vector<32x16xf32>
    %c0_39 = arith.constant 0 : index
    %c0_40 = arith.constant 0 : index
    %109 = vector.load %arg5[%c0_39, %c0_40] : memref<32x16xf32, #tpu.memory_space<vmem>>, vector<32x16xf32>
    tpu.vector_store %arg5[%c0_39, %c0_40], %108 {strides = array<i32>} : memref<32x16xf32, #tpu.memory_space<vmem>>, vector<32x16xf32>,
    return
  }
  func.func @transform_0(%arg0: i32, %arg1: i32) -> (i32, i32) {
    %c0_i32 = arith.constant 0 : i32
    %c0_i32_0 = arith.constant 0 : i32
    return %arg0, %c0_i32 : i32, i32
  }
  func.func @transform_1(%arg0: i32, %arg1: i32) -> (i32, i32) {
    %c0_i32 = arith.constant 0 : i32
    %0 = arith.subi %c0_i32, %arg1 : i32
    %c0_i32_0 = arith.constant 0 : i32
    return %arg0, %0 : i32, i32
  }
  func.func @transform_2(%arg0: i32, %arg1: i32) -> (i32, i32) {
    %c0_i32 = arith.constant 0 : i32
    %c0_i32_0 = arith.constant 0 : i32
    %c0_i32_1 = arith.constant 0 : i32
    return %c0_i32, %c0_i32_0 : i32, i32
  }
  func.func @transform_3(%arg0: i32, %arg1: i32) -> (i32, i32) {
    %c0_i32 = arith.constant 0 : i32
    %0 = arith.subi %c0_i32, %arg1 : i32
    %c0_i32_0 = arith.constant 0 : i32
    return %arg0, %0 : i32, i32
  }
}

</mosaic_0001>

<bundles_post_ra>
// kernel: tpu_custom_call.1
= control target key start
LH: loop header
LB: loop body
LE: loop exit
PB: predicated region body
PF: predicated region fallthrough
CT: control target
= control target key end

     0   :  { %vm59_vm0 = vcmask 261120   ;;  %v162_v0 = vlaneseq  ;;  %vm46_vm1 = vcmask 7168   ;;  %v860_v9 = vmov 0   ;;  %s991_s2 = inlined_call_operand.vmem [shape: f32[32,8], index: 2, kind: input, shape index: {}]   ;;  %s992_s0 = inlined_call_operand.vmem [shape: f32[32,32], index: 0, kind: input, shape index: {}]   ;;  %s993_s1 = inlined_call_operand.vmem [shape: f32[32,16], index: 1, kind: input, shape index: {}]   ;;  %s994_s3 = inlined_call_operand.vmem [shape: f32[32,16], index: 3, kind: output, shape index: {}]  }
   0x1   :  { %v55_v1 = vld [vmem:[%s991_s2] sm:$0xff]  ;;  %v56_v2 = vld [vmem:[%s991_s2 + $0x8] sm:$0xff]  ;;  %v57_v3 = vld [vmem:[%s991_s2 + $0x10] sm:$0xff]  ;;  %811 = vset.pattern.permute.xlu1 %v860_v9  ;;  %v861_v10 = vmov 0.0   ;;  %812 = vset.pattern.permute.xlu0 %v860_v9  ;;  %vm173_vm2 = vcmask 130048   ;;  %v862_v49 = vmov 1  }
   0x2   :  { %v790_v4 = vpack.c.bf16 %v56_v2, %v55_v1  ;;  %v58_v5 = vld [vmem:[%s991_s2 + $0x18] sm:$0xff]  ;;  %v51_v6 = vld [vmem:[%s992_s0] sm:$0xff]  ;;  %v163_v7 = vshrl.u32 %v162_v0, 7  ;;  %v166_v8 = vand.u32 127, %v162_v0  ;;  %49 = vst.msk [vmem:[#allocation3 + $0x10] sm:$0xff] %vm46_vm1, %v861_v10  ;;  %47 = vst.msk [vmem:[#allocation3] sm:$0xff] %vm46_vm1, %v861_v10 }
   0x3   :  { %48 = vst.msk [vmem:[#allocation3 + $0x8] sm:$0xff] %vm46_vm1, %v861_v10  ;;  %50 = vst.msk [vmem:[#allocation3 + $0x18] sm:$0xff] %vm46_vm1, %v861_v10  ;;  %v794_v11 = vpack.c.bf16 %v58_v5, %v57_v3  ;;  %774 = vmatprep.mubr.msk.f32.mxu0 %vm59_vm0, %v51_v6  ;;  %v176_v12 = vld [vmem:[%s993_s1] sm:$0xff]  ;;  %v177_v14 = vld [vmem:[%s993_s1 + $0x8] sm:$0xff]  ;;  %vm157_vm5 = vcmask 64512   ;;  %v863_v1 = vmov 3  }
   0x4   :  { %791 = vmatprep.subr.bf16.mxu0 %v790_v4  ;;  %v164_v13 = vadd.s32 8, %v163_v7  ;;  %vm167_vm3 = vcmp.ge.s32.totalorder %v163_v7, %v166_v8  ;;  %v178_v15 = vld [vmem:[%s993_s1 + $0x10] sm:$0xff]  ;;  %v179_v16 = vld [vmem:[%s993_s1 + $0x18] sm:$0xff]  ;;  %v716_v17 = vmul.f32 -1.442695, %v176_v12  ;;  %v52_v23 = vld [vmem:[%s992_s0 + $0x8] sm:$0xff] }
   0x5   :  { %793 = vmatpush3.bf16.msra.mxu0 %v790_v4  ;;  %v714_v18 = vsel %vm167_vm3, 1.0, %v861_v10  ;;  %v717_v19 = vmul.f32 -1.442695, %v177_v14  ;;  %v718_v20 = vmul.f32 -1.442695, %v178_v15  ;;  %v53_v25 = vld [vmem:[%s992_s0 + $0x10] sm:$0xff] }
   0x6   :  { %795 = vmatprep.subr.bf16.mxu0 %v794_v11  ;;  %vm168_vm4 = vcmp.ge.s32.totalorder %v164_v13, %v166_v8  ;;  %174 = vst.msk [vmem:[#allocation4] sm:$0xff] %vm173_vm2, %v714_v18  ;;  %844 = vpow2.f32 %v716_v17  ;;  %v719_v21 = vmul.f32 -1.442695, %v179_v16  ;;  %v54_v27 = vld [vmem:[%s992_s0 + $0x18] sm:$0xff]  ;;  %v864_v2 = vmov 2  }
   0x7   :  { %v715_v22 = vsel %vm168_vm4, 1.0, %v861_v10  ;;  %846 = vpow2.f32 %v717_v19  ;;  %v865_v3 = vmov 5   ;;  %v866_v4 = vmov 4  }
   0x8   :  { %175 = vst.msk [vmem:[#allocation4 + $0x8] sm:$0xff] %vm173_vm2, %v715_v22  ;;  %848 = vpow2.f32 %v718_v20  ;;  %v867_v7 = vmov 7   ;;  %v868_v8 = vmov 6  }
   0x9   :  { %797 = vmatpush3.bf16.msra.mxu0 %v794_v11  ;;  %850 = vpow2.f32 %v719_v21  ;;  %v208_v24 = vld [vmem:[#allocation3 + $0x10] sm:$0xff]  ;;  %v206_v47 = vld [vmem:[#allocation3] sm:$0xff] }
   0xa   :  { %222 = vperm.xlu1 %811, %v208_v24   ;;  %v209_v26 = vld [vmem:[#allocation3 + $0x18] sm:$0xff]  ;;  %v207_v48 = vld [vmem:[#allocation3 + $0x8] sm:$0xff] }
   0xc   :  { %775 = vmatmul.mubr.msk.f32.vlgmr.msra.gmra.mrb[0].mxu0 %vm59_vm0, %v52_v23 }
   0xd   :  { %777 = vmatprep.mubr.msk.f32.mxu0 %vm59_vm0, %v53_v25  ;;  %v204_v28 = vld [vmem:[#allocation4] sm:$0xff] }
   0xe   :  { %227 = vperm.xlu1 %811, %v209_v26  }
   0xf   :  { %v205_v29 = vld [vmem:[#allocation4 + $0x8] sm:$0xff] }
  0x10   :  { %v845_v30 = vpop.eup %844  ;;  %778 = vmatmul.mubr.msk.f32.gmra.mrb[2].mxu0 %vm59_vm0, %v54_v27  ;;  %v798_v31 = vpack.c.bf16 %v205_v29, %v204_v28 }
  0x11   :  { %v847_v32 = vpop.eup %846  ;;  %v192_v33 = vadd.f32 1.0, %v845_v30 }
  0x12   :  { %v849_v34 = vpop.eup %848  ;;  %799 = vmatprep.subr.bf16.mxu1 %v798_v31  ;;  %v193_v35 = vadd.f32 1.0, %v847_v32  ;;  %813 = vset.pattern.permute.xlu1 %v862_v49 }
  0x13   :  { %v851_v36 = vpop.eup %850  ;;  %801 = vmatpush3.bf16.msra.mxu1 %v798_v31  ;;  %v194_v37 = vadd.f32 1.0, %v849_v34  ;;  %852 = vrcp.f32 %v192_v33 }
  0x14   :  { %v195_v38 = vadd.f32 1.0, %v851_v36  ;;  %854 = vrcp.f32 %v193_v35 }
  0x15   :  { %856 = vrcp.f32 %v194_v37 }
  0x16   :  { %858 = vrcp.f32 %v195_v38 }
  0x1d   :  { %v853_v39 = vpop.eup %852 }
  0x1e   :  { %v855_v40 = vpop.eup %854  ;;  %784 = vmatprep.mubr.msk.f32.mxu1 %vm173_vm2, %v853_v39  ;;  %v332_v41 = vsel %vm173_vm2, %v853_v39, 0.0 }
  0x1f   :  { %v857_v42 = vpop.eup %856  ;;  %785 = vmatmul.mubr.msk.f32.vlgmr.msra.gmra.mrb[0].mxu1 %vm173_vm2, %v855_v40  ;;  %333 = vadd.xlane.f32.xlu0 %v332_v41  ;;  %v335_v46 = vsel %vm173_vm2, %v855_v40, 0.0 }
  0x20   :  { %v859_v43 = vpop.eup %858  ;;  %787 = vmatprep.mubr.msk.f32.mxu1 %vm173_vm2, %v857_v42  ;;  %v338_v44 = vsel %vm173_vm2, %v857_v42, 0.0 }
  0x21   :  { %v341_v45 = vsel %vm173_vm2, %v859_v43, 0.0 }
  0x23   :  { %788 = vmatmul.mubr.msk.f32.gmra.mrb[2].mxu1 %vm173_vm2, %v859_v43  ;;  %339 = vadd.xlane.f32.xlu0 %v338_v44 }
  0x27   :  { %342 = vadd.xlane.f32.xlu0 %v341_v45 }
  0x32   :  { %336 = vadd.xlane.f32.xlu1 %v335_v46 }
  0x3d   :  { %212 = vperm.xlu0 %812, %v206_v47  }
  0x41   :  { %217 = vperm.xlu0 %812, %v207_v48  }
  0x89   :  { %v946_v50 = vpop.permute.xlu1 %222 }
  0x8d   :  { %v228_v51 = vpop.permute.xlu1 %227 }
  0xac   :  { %v334_v52 = vpop.xlane.xlu0 %333 }
  0xad   :  { %v344_v54 = vadd.f32 %v334_v52, %v206_v47 }
  0xaf   :  { %349 = vst.msk [vmem:[#allocation3] sm:$0xff] %vm46_vm1, %v344_v54 }
  0xb0   :  { %v340_v56 = vpop.xlane.xlu0 %339 }
  0xb1   :  { %v346_v57 = vadd.f32 %v340_v56, %v208_v24 }
  0xb3   :  { %351 = vst.msk [vmem:[#allocation3 + $0x10] sm:$0xff] %vm46_vm1, %v346_v57 }
  0xb4   :  { %v343_v58 = vpop.xlane.xlu0 %342 }
  0xb5   :  { %v347_v59 = vadd.f32 %v343_v58, %v209_v26 }
  0xb7   :  { %352 = vst.msk [vmem:[#allocation3 + $0x18] sm:$0xff] %vm46_vm1, %v347_v59 }
  0xbc   :  { %v213_v16 = vpop.permute.xlu0 %212 }
  0xbf   :  { %v337_v53 = vpop.xlane.xlu1 %336 }
  0xc0   :  { %v345_v55 = vadd.f32 %v337_v53, %v207_v48  ;;  %v218_v17 = vpop.permute.xlu0 %217 }
  0xc2   :  { %350 = vst.msk [vmem:[#allocation3 + $0x8] sm:$0xff] %vm46_vm1, %v345_v55 }
  0xdf   :  { %v776_v60 = vpop.f32.mrb[0].mxu0 }
  0xe0   :  { %159 = vst.msk [vmem:[#allocation2 + $0x8] sm:$0xff] %vm157_vm5, %v776_v60  ;;  %v138_v61 = vpop.f32.mrb[1].mxu0 }
  0xe1   :  { %158 = vst.msk [vmem:[#allocation2] sm:$0xff] %vm157_vm5, %v138_v61 }
  0xe3   :  { %v779_v62 = vpop.f32.mrb[2].mxu0 }
  0xe4   :  { %161 = vst.msk [vmem:[#allocation2 + $0x18] sm:$0xff] %vm157_vm5, %v779_v62  ;;  %v148_v63 = vpop.f32.mrb[3].mxu0 }
  0xe5   :  { %160 = vst.msk [vmem:[#allocation2 + $0x10] sm:$0xff] %vm157_vm5, %v148_v63 }
  0xe7   :  { %v354_v0 = vld [vmem:[#allocation2 + $0x8] sm:$0xff] }
  0xe8   :  { %418 = vperm.xlu1 %813, %v354_v0   ;;  %376 = vperm.xlu0 %812, %v354_v0   ;;  %v353_v13 = vld [vmem:[#allocation2] sm:$0xff] }
  0xeb   :  { %v356_v14 = vld [vmem:[#allocation2 + $0x18] sm:$0xff] }
  0xec   :  { %815 = vset.pattern.permute.xlu1 %v863_v1  ;;  %814 = vset.pattern.permute.xlu0 %v864_v2  ;;  %v355_v15 = vld [vmem:[#allocation2 + $0x10] sm:$0xff] }
  0xed   :  { %498 = vperm.xlu1 %815, %v354_v0   ;;  %458 = vperm.xlu0 %814, %v354_v0  }
  0xf1   :  { %817 = vset.pattern.permute.xlu1 %v865_v3  ;;  %816 = vset.pattern.permute.xlu0 %v866_v4 }
  0xf2   :  { %578 = vperm.xlu1 %817, %v354_v0   ;;  %538 = vperm.xlu0 %816, %v354_v0   ;;  %v953_v5 = vpop.f32.mrb[0].mxu1 }
  0xf3   :  { %v955_v6 = vpop.f32.mrb[1].mxu1 }
  0xf4   :  { %v310_v22 = vadd.f32 %v955_v6, %v213_v16 }
  0xf6   :  { %819 = vset.pattern.permute.xlu1 %v867_v7  ;;  %818 = vset.pattern.permute.xlu0 %v868_v8  ;;  %v789_v10 = vpop.f32.mrb[2].mxu1  ;;  %v328_v26 = vmin.f32 %v310_v22, 7.0 }
  0xf7   :  { %658 = vperm.xlu1 %819, %v354_v0   ;;  %618 = vperm.xlu0 %818, %v354_v0   ;;  %v957_v11 = vadd.f32 %v789_v10, %v228_v51  ;;  %v959_v12 = vpop.f32.mrb[3].mxu1 }
  0xf8   :  { %v724_v32 = vadd.f32 -1.0, %v328_v26  ;;  %v357_v62 = vand.u32 2147483647, %v328_v26 }
  0xfa   :  { %v728_v41 = vadd.f32 -1.0, %v724_v32  ;;  %v401_v0 = vand.u32 2147483647, %v724_v32 }
  0xfb   :  { %820 = vset.pattern.permute.xlu1 %v860_v9  ;;  %821 = vset.pattern.permute.xlu0 %v862_v49 }
  0xfc   :  { %414 = vperm.xlu0 %821, %v353_v13   ;;  %371 = vperm.xlu1 %820, %v353_v13   ;;  %v732_v57 = vadd.f32 -1.0, %v728_v41  ;;  %v441_v16 = vand.u32 2147483647, %v728_v41 }
  0xfe   :  { %v481_v22 = vand.u32 2147483647, %v732_v57 }
 0x100   :  { %823 = vset.pattern.permute.xlu0 %v863_v1  ;;  %822 = vset.pattern.permute.xlu1 %v864_v2 }
 0x101   :  { %494 = vperm.xlu0 %823, %v353_v13   ;;  %454 = vperm.xlu1 %822, %v353_v13  }
 0x105   :  { %825 = vset.pattern.permute.xlu0 %v865_v3  ;;  %824 = vset.pattern.permute.xlu1 %v866_v4 }
 0x106   :  { %574 = vperm.xlu0 %825, %v353_v13   ;;  %534 = vperm.xlu1 %824, %v353_v13  }
 0x10a   :  { %827 = vset.pattern.permute.xlu0 %v867_v7  ;;  %826 = vset.pattern.permute.xlu1 %v868_v8 }
 0x10b   :  { %654 = vperm.xlu0 %827, %v353_v13   ;;  %614 = vperm.xlu1 %826, %v353_v13   ;;  %v405_v13 = vsub.f32 1.0, %v401_v0 }
 0x10f   :  { %829 = vset.pattern.permute.xlu0 %v862_v49  ;;  %828 = vset.pattern.permute.xlu1 %v860_v9 }
 0x110   :  { %426 = vperm.xlu0 %829, %v356_v14   ;;  %386 = vperm.xlu1 %828, %v356_v14  }
 0x114   :  { %831 = vset.pattern.permute.xlu0 %v863_v1  ;;  %830 = vset.pattern.permute.xlu1 %v864_v2 }
 0x115   :  { %506 = vperm.xlu0 %831, %v356_v14   ;;  %466 = vperm.xlu1 %830, %v356_v14  }
 0x119   :  { %833 = vset.pattern.permute.xlu0 %v865_v3  ;;  %832 = vset.pattern.permute.xlu1 %v866_v4 }
 0x11a   :  { %586 = vperm.xlu0 %833, %v356_v14   ;;  %546 = vperm.xlu1 %832, %v356_v14  }
 0x11e   :  { %843 = vset.pattern.permute.xlu0 %v867_v7  ;;  %834 = vset.pattern.permute.xlu1 %v868_v8 }
 0x11f   :  { %666 = vperm.xlu0 %843, %v356_v14   ;;  %626 = vperm.xlu1 %834, %v356_v14   ;;  %v361_v14 = vsub.f32 1.0, %v357_v62 }
 0x123   :  { %835 = vset.pattern.permute.xlu1 %v860_v9  ;;  %v315_v9 = vadd.f32 %v953_v5, %v218_v17  ;;  %v736_v5 = vadd.f32 -1.0, %v732_v57 }
 0x124   :  { %381 = vperm.xlu1 %835, %v355_v15  }
 0x125   :  { %v329_v18 = vmin.f32 %v315_v9, 7.0  ;;  %v740_v17 = vadd.f32 -1.0, %v736_v5 }
 0x127   :  { %v725_v19 = vadd.f32 -1.0, %v329_v18  ;;  %v358_v23 = vand.u32 2147483647, %v329_v18 }
 0x128   :  { %836 = vset.pattern.permute.xlu1 %v862_v49 }
 0x129   :  { %422 = vperm.xlu1 %836, %v355_v15   ;;  %v729_v20 = vadd.f32 -1.0, %v725_v19  ;;  %v402_v24 = vand.u32 2147483647, %v725_v19  ;;  %v362_v28 = vsub.f32 1.0, %v358_v23  ;;  %v409_v23 = vmax.f32 %v405_v13, 0.0 }
 0x12b   :  { %v733_v21 = vadd.f32 -1.0, %v729_v20  ;;  %v406_v27 = vsub.f32 1.0, %v402_v24  ;;  %v442_v29 = vand.u32 2147483647, %v729_v20  ;;  %v366_v34 = vmax.f32 %v362_v28, 0.0 }
 0x12c   :  { %v331_v20 = vmin.f32 %v957_v11, 7.0  ;;  %v365_v24 = vmax.f32 %v361_v14, 0.0  ;;  %v744_v28 = vadd.f32 -1.0, %v740_v17 }
 0x12d   :  { %837 = vset.pattern.permute.xlu1 %v864_v2  ;;  %v737_v25 = vadd.f32 -1.0, %v733_v21  ;;  %v482_v31 = vand.u32 2147483647, %v733_v21  ;;  %v410_v33 = vmax.f32 %v406_v27, 0.0  ;;  %v446_v35 = vsub.f32 1.0, %v442_v29 }
 0x12e   :  { %462 = vperm.xlu1 %837, %v355_v15   ;;  %v445_v27 = vsub.f32 1.0, %v441_v16  ;;  %v521_v29 = vand.u32 2147483647, %v736_v5  ;;  %v360_v62 = vand.u32 2147483647, %v331_v20 }
 0x12f   :  { %v741_v30 = vadd.f32 -1.0, %v737_v25  ;;  %v522_v37 = vand.u32 2147483647, %v737_v25  ;;  %v486_v40 = vsub.f32 1.0, %v482_v31  ;;  %v450_v45 = vmax.f32 %v446_v35, 0.0 }
 0x130   :  { %v561_v35 = vand.u32 2147483647, %v740_v17 }
 0x131   :  { %v745_v36 = vadd.f32 -1.0, %v741_v30  ;;  %v562_v42 = vand.u32 2147483647, %v741_v30  ;;  %v526_v47 = vsub.f32 1.0, %v522_v37  ;;  %v490_v48 = vmax.f32 %v486_v40, 0.0 }
 0x132   :  { %838 = vset.pattern.permute.xlu1 %v863_v1  ;;  %v727_v30 = vadd.f32 -1.0, %v331_v20  ;;  %v449_v37 = vmax.f32 %v445_v27, 0.0 }
 0x133   :  { %502 = vperm.xlu1 %838, %v355_v15   ;;  %v749_v46 = vadd.f32 -1.0, %v745_v36  ;;  %v602_v49 = vand.u32 2147483647, %v745_v36  ;;  %v566_v53 = vsub.f32 1.0, %v562_v42  ;;  %v530_v58 = vmax.f32 %v526_v47, 0.0 }
 0x134   :  { %v731_v40 = vadd.f32 -1.0, %v727_v30  ;;  %v601_v42 = vand.u32 2147483647, %v744_v28 }
 0x135   :  { %v642_v56 = vand.u32 2147483647, %v749_v46  ;;  %v606_v61 = vsub.f32 1.0, %v602_v49  ;;  %v570_v63 = vmax.f32 %v566_v53, 0.0 }
 0x136   :  { %v605_v53 = vsub.f32 1.0, %v601_v42  ;;  %v444_v13 = vand.u32 2147483647, %v731_v40  ;;  %v320_v42 = vadd.f32 %v959_v12, %v946_v50 }
 0x137   :  { %839 = vset.pattern.permute.xlu1 %v866_v4  ;;  %v646_v4 = vsub.f32 1.0, %v642_v56 }
 0x138   :  { %542 = vperm.xlu1 %839, %v355_v15  }
 0x13c   :  { %840 = vset.pattern.permute.xlu1 %v865_v3 }
 0x13d   :  { %582 = vperm.xlu1 %840, %v355_v15  }
 0x141   :  { %841 = vset.pattern.permute.xlu1 %v868_v8 }
 0x142   :  { %622 = vperm.xlu1 %841, %v355_v15  }
 0x146   :  { %842 = vset.pattern.permute.xlu1 %v867_v7  ;;  %v610_v7 = vmax.f32 %v606_v61, 0.0  ;;  %v404_v61 = vand.u32 2147483647, %v727_v30 }
 0x147   :  { %662 = vperm.xlu1 %842, %v355_v15   ;;  %v650_v15 = vmax.f32 %v646_v4, 0.0 }
 0x167   :  { %v419_v38 = vpop.permute.xlu1 %418  ;;  %v377_v39 = vpop.permute.xlu0 %376 }
 0x168   :  { %v430_v43 = vmul.f32 %v419_v38, %v410_v33  ;;  %v390_v44 = vmul.f32 %v377_v39, %v366_v34  ;;  %v485_v34 = vsub.f32 1.0, %v481_v22  ;;  %v748_v38 = vadd.f32 -1.0, %v744_v28 }
 0x169   :  { %v525_v39 = vsub.f32 1.0, %v521_v29  ;;  %v448_v22 = vsub.f32 1.0, %v444_v13 }
 0x16a   :  { %v434_v54 = vadd.f32 %v430_v43, %v390_v44  ;;  %v489_v41 = vmax.f32 %v485_v34, 0.0 }
 0x16b   :  { %v529_v49 = vmax.f32 %v525_v39, 0.0  ;;  %v452_v29 = vmax.f32 %v448_v22, 0.0 }
 0x16c   :  { %v499_v51 = vpop.permute.xlu1 %498  ;;  %v459_v52 = vpop.permute.xlu0 %458 }
 0x16d   :  { %v470_v55 = vmul.f32 %v459_v52, %v450_v45  ;;  %v510_v59 = vmul.f32 %v499_v51, %v490_v48  ;;  %v565_v45 = vsub.f32 1.0, %v561_v35  ;;  %v641_v48 = vand.u32 2147483647, %v748_v38 }
 0x16f   :  { %v474_v60 = vadd.f32 %v470_v55, %v434_v54  ;;  %v735_v54 = vadd.f32 -1.0, %v731_v40  ;;  %v569_v55 = vmax.f32 %v565_v45, 0.0 }
 0x171   :  { %v579_v1 = vpop.permute.xlu1 %578  ;;  %v514_v2 = vadd.f32 %v510_v59, %v474_v60  ;;  %v539_v3 = vpop.permute.xlu0 %538  ;;  %v645_v59 = vsub.f32 1.0, %v641_v48  ;;  %v739_v0 = vadd.f32 -1.0, %v735_v54  ;;  %v484_v17 = vand.u32 2147483647, %v735_v54 }
 0x172   :  { %v550_v6 = vmul.f32 %v539_v3, %v530_v58  ;;  %v590_v8 = vmul.f32 %v579_v1, %v570_v63  ;;  %v609_v63 = vmax.f32 %v605_v53, 0.0  ;;  %v330_v53 = vmin.f32 %v320_v42, 7.0 }
 0x173   :  { %v649_v3 = vmax.f32 %v645_v59, 0.0  ;;  %v743_v14 = vadd.f32 -1.0, %v739_v0  ;;  %v488_v27 = vsub.f32 1.0, %v484_v17 }
 0x174   :  { %v554_v10 = vadd.f32 %v550_v6, %v514_v2 }
 0x175   :  { %v564_v28 = vand.u32 2147483647, %v743_v14  ;;  %v492_v35 = vmax.f32 %v488_v27, 0.0 }
 0x176   :  { %v659_v9 = vpop.permute.xlu1 %658  ;;  %v594_v18 = vadd.f32 %v590_v8, %v554_v10  ;;  %v619_v19 = vpop.permute.xlu0 %618  ;;  %v364_v10 = vsub.f32 1.0, %v360_v62 }
 0x177   :  { %v630_v21 = vmul.f32 %v619_v19, %v610_v7  ;;  %v670_v25 = vmul.f32 %v659_v9, %v650_v15  ;;  %v408_v7 = vsub.f32 1.0, %v404_v61 }
 0x178   :  { %v368_v20 = vmax.f32 %v364_v10, 0.0 }
 0x179   :  { %v634_v26 = vadd.f32 %v630_v21, %v594_v18  ;;  %v412_v9 = vmax.f32 %v408_v7, 0.0 }
 0x17b   :  { %v674_v31 = vadd.f32 %v670_v25, %v634_v26  ;;  %v415_v32 = vpop.permute.xlu0 %414  ;;  %v372_v33 = vpop.permute.xlu1 %371 }
 0x17c   :  { %v429_v11 = vmul.f32 %v415_v32, %v409_v23  ;;  %v389_v36 = vmul.f32 %v372_v33, %v365_v24  ;;  %v747_v23 = vadd.f32 -1.0, %v743_v14  ;;  %v524_v24 = vand.u32 2147483647, %v739_v0 }
 0x17d   :  { %678 = vst.msk [vmem:[%s994_s3 + $0x8] sm:$0xff] %vm173_vm2, %v674_v31 }
 0x17e   :  { %v433_v46 = vadd.f32 %v429_v11, %v389_v36  ;;  %v751_v30 = vadd.f32 -1.0, %v747_v23  ;;  %v528_v33 = vsub.f32 1.0, %v524_v24  ;;  %v604_v36 = vand.u32 2147483647, %v747_v23 }
 0x180   :  { %v495_v43 = vpop.permute.xlu0 %494  ;;  %v455_v44 = vpop.permute.xlu1 %454  ;;  %v644_v40 = vand.u32 2147483647, %v751_v30 }
 0x181   :  { %v469_v47 = vmul.f32 %v455_v44, %v449_v37  ;;  %v509_v51 = vmul.f32 %v495_v43, %v489_v41  ;;  %v568_v37 = vsub.f32 1.0, %v564_v28  ;;  %v532_v41 = vmax.f32 %v528_v33, 0.0 }
 0x183   :  { %v473_v52 = vadd.f32 %v469_v47, %v433_v46  ;;  %v608_v46 = vsub.f32 1.0, %v604_v36  ;;  %v572_v47 = vmax.f32 %v568_v37, 0.0 }
 0x185   :  { %v575_v56 = vpop.permute.xlu0 %574  ;;  %v513_v57 = vadd.f32 %v509_v51, %v473_v52  ;;  %v535_v58 = vpop.permute.xlu1 %534  ;;  %v612_v54 = vmax.f32 %v608_v46, 0.0 }
 0x186   :  { %v549_v60 = vmul.f32 %v535_v58, %v529_v49  ;;  %v589_v1 = vmul.f32 %v575_v56, %v569_v55  ;;  %v648_v49 = vsub.f32 1.0, %v644_v40 }
 0x188   :  { %v553_v2 = vadd.f32 %v549_v60, %v513_v57  ;;  %v652_v58 = vmax.f32 %v648_v49, 0.0  ;;  %v726_v60 = vadd.f32 -1.0, %v330_v53 }
 0x18a   :  { %v655_v4 = vpop.permute.xlu0 %654  ;;  %v593_v5 = vadd.f32 %v589_v1, %v553_v2  ;;  %v615_v6 = vpop.permute.xlu1 %614 }
 0x18b   :  { %v629_v8 = vmul.f32 %v615_v6, %v609_v63  ;;  %v669_v15 = vmul.f32 %v655_v4, %v649_v3  ;;  %v730_v63 = vadd.f32 -1.0, %v726_v60  ;;  %v403_v4 = vand.u32 2147483647, %v726_v60 }
 0x18d   :  { %v633_v16 = vadd.f32 %v629_v8, %v593_v5  ;;  %v734_v1 = vadd.f32 -1.0, %v730_v63  ;;  %v359_v5 = vand.u32 2147483647, %v330_v53  ;;  %v443_v6 = vand.u32 2147483647, %v730_v63 }
 0x18e   :  { %v407_v10 = vsub.f32 1.0, %v403_v4 }
 0x18f   :  { %v673_v18 = vadd.f32 %v669_v15, %v633_v16  ;;  %v427_v19 = vpop.permute.xlu0 %426  ;;  %v387_v21 = vpop.permute.xlu1 %386  ;;  %v738_v3 = vadd.f32 -1.0, %v734_v1  ;;  %v483_v13 = vand.u32 2147483647, %v734_v1  ;;  %v363_v14 = vsub.f32 1.0, %v359_v5 }
 0x190   :  { %v432_v25 = vmul.f32 %v427_v19, %v412_v9  ;;  %v392_v26 = vmul.f32 %v387_v21, %v368_v20  ;;  %v447_v16 = vsub.f32 1.0, %v443_v6  ;;  %v411_v9 = vmax.f32 %v407_v10, 0.0 }
 0x191   :  { %677 = vst.msk [vmem:[%s994_s3] sm:$0xff] %vm173_vm2, %v673_v18  ;;  %v742_v7 = vadd.f32 -1.0, %v738_v3  ;;  %v523_v15 = vand.u32 2147483647, %v738_v3  ;;  %v487_v18 = vsub.f32 1.0, %v483_v13  ;;  %v367_v21 = vmax.f32 %v363_v14, 0.0 }
 0x192   :  { %v436_v34 = vadd.f32 %v432_v25, %v392_v26  ;;  %v451_v24 = vmax.f32 %v447_v16, 0.0 }
 0x193   :  { %v746_v17 = vadd.f32 -1.0, %v742_v7  ;;  %v563_v20 = vand.u32 2147483647, %v742_v7  ;;  %v527_v22 = vsub.f32 1.0, %v523_v15 }
 0x194   :  { %v507_v31 = vpop.permute.xlu0 %506  ;;  %v467_v32 = vpop.permute.xlu1 %466 }
 0x195   :  { %v472_v11 = vmul.f32 %v467_v32, %v452_v29  ;;  %v512_v38 = vmul.f32 %v507_v31, %v492_v35  ;;  %v603_v25 = vand.u32 2147483647, %v746_v17  ;;  %v750_v26 = vadd.f32 -1.0, %v746_v17 }
 0x196   :  { %v491_v29 = vmax.f32 %v487_v18, 0.0  ;;  %v567_v30 = vsub.f32 1.0, %v563_v20  ;;  %v531_v31 = vmax.f32 %v527_v22, 0.0 }
 0x197   :  { %v476_v39 = vadd.f32 %v472_v11, %v436_v34  ;;  %v607_v35 = vsub.f32 1.0, %v603_v25  ;;  %v643_v11 = vand.u32 2147483647, %v750_v26 }
 0x199   :  { %v587_v43 = vpop.permute.xlu0 %586  ;;  %v516_v44 = vadd.f32 %v512_v38, %v476_v39  ;;  %v547_v45 = vpop.permute.xlu1 %546  ;;  %v571_v38 = vmax.f32 %v567_v30, 0.0 }
 0x19a   :  { %v552_v48 = vmul.f32 %v547_v45, %v532_v41  ;;  %v592_v51 = vmul.f32 %v587_v43, %v572_v47  ;;  %v611_v41 = vmax.f32 %v607_v35, 0.0  ;;  %v647_v43 = vsub.f32 1.0, %v643_v11 }
 0x19c   :  { %v556_v52 = vadd.f32 %v552_v48, %v516_v44  ;;  %v651_v47 = vmax.f32 %v647_v43, 0.0 }
 0x19e   :  { %v667_v55 = vpop.permute.xlu0 %666  ;;  %v596_v56 = vadd.f32 %v592_v51, %v556_v52  ;;  %v627_v57 = vpop.permute.xlu1 %626 }
 0x19f   :  { %v632_v59 = vmul.f32 %v627_v57, %v612_v54  ;;  %v672_v61 = vmul.f32 %v667_v55, %v652_v58 }
 0x1a1   :  { %v636_v62 = vadd.f32 %v632_v59, %v596_v56 }
 0x1a3   :  { %v676_v50 = vadd.f32 %v672_v61, %v636_v62  ;;  %v382_v12 = vpop.permute.xlu1 %381 }
 0x1a4   :  { %v391_v27 = vmul.f32 %v382_v12, %v367_v21 }
 0x1a5   :  { %680 = vst.msk [vmem:[%s994_s3 + $0x18] sm:$0xff] %vm173_vm2, %v676_v50 }
 0x1a8   :  { %v423_v0 = vpop.permute.xlu1 %422 }
 0x1a9   :  { %v431_v23 = vmul.f32 %v423_v0, %v411_v9 }
 0x1ab   :  { %v435_v33 = vadd.f32 %v431_v23, %v391_v27 }
 0x1ad   :  { %v463_v2 = vpop.permute.xlu1 %462 }
 0x1ae   :  { %v471_v28 = vmul.f32 %v463_v2, %v451_v24 }
 0x1b0   :  { %v475_v36 = vadd.f32 %v471_v28, %v435_v33 }
 0x1b2   :  { %v503_v8 = vpop.permute.xlu1 %502 }
 0x1b3   :  { %v511_v34 = vmul.f32 %v503_v8, %v491_v29 }
 0x1b5   :  { %v515_v39 = vadd.f32 %v511_v34, %v475_v36 }
 0x1b7   :  { %v543_v19 = vpop.permute.xlu1 %542 }
 0x1b8   :  { %v551_v37 = vmul.f32 %v543_v19, %v531_v31 }
 0x1ba   :  { %v555_v44 = vadd.f32 %v551_v37, %v515_v39 }
 0x1bc   :  { %v583_v32 = vpop.permute.xlu1 %582 }
 0x1bd   :  { %v591_v40 = vmul.f32 %v583_v32, %v571_v38 }
 0x1bf   :  { %v595_v46 = vadd.f32 %v591_v40, %v555_v44 }
 0x1c1   :  { %v623_v42 = vpop.permute.xlu1 %622 }
 0x1c2   :  { %v631_v45 = vmul.f32 %v623_v42, %v611_v41 }
 0x1c4   :  { %v635_v49 = vadd.f32 %v631_v45, %v595_v46 }
 0x1c6   :  { %v663_v48 = vpop.permute.xlu1 %662 }
 0x1c7   :  { %v671_v51 = vmul.f32 %v663_v48, %v651_v47 }
 0x1c9   :  { %v675_v52 = vadd.f32 %v671_v51, %v635_v49 }
 0x1cb   :  { %679 = vst.msk [vmem:[%s994_s3 + $0x10] sm:$0xff] %vm173_vm2, %v675_v52 }

</bundles_post_ra>
